<compile_context>
chip_gen: v7x
topology: tpu7x:2x2x1
jax: 0.10.0
libtpu: 0.0.40
codegen_flags: <defaults>
</compile_context>

<pallas_src>
import jax
import jax.numpy as jnp
from jax.experimental import pallas as pl
from jax.experimental.pallas import tpu as pltpu


_MAX_TILE_LANES = 16384  # (2, 8, 16384) f32 x1 block = 1 MiB


def _sigmoid_eup(x):
    # sigmoid(x) == 0.5 * tanh(0.5 * x) + 0.5  -> single EUP tanh per call.
    return 0.5 * jnp.tanh(0.5 * x) + 0.5


def _choose_tile(lanes):
    """Pick the lane-tile: big blocks, but >= 2 grid steps when possible."""
    if lanes <= 128:
        return lanes
    tile = min(_MAX_TILE_LANES, lanes // 2)
    return max(128, (tile // 128) * 128)


def _model_kernel(x1_ref, x2_ref, out_ref):
    # x1_ref : (2, 8, T) f32  rows of the 8-axis = i*4 + c  (i = middle dim of
    #                          the original (B,2,2); c = batch chunk); first
    #                          axis is j (the softmax'ed last dim).
    # x2_ref : (8, T)   f32   same (i*4 + c, lane) packing.
    # out_ref: (2, 8, T) f32  same layout as x1_ref.
    a = x1_ref[0]            # x1[..., 0]
    b = x1_ref[1]            # x1[..., 1]
    x2 = x2_ref[...]

    # softmax over the 2-wide last dim: [sigmoid(a-b), 1 - sigmoid(a-b)].
    sm_a = _sigmoid_eup(a - b)
    sm_b = 1.0 - sm_a

    x4 = _sigmoid_eup(x2)    # sigmoid(x2)
    x5 = x2 * x2

    v1_a = (a + sm_a) * x2
    v1_b = (b + sm_b) * x2

    out_ref[0] = _sigmoid_eup(x4 * (v1_a + x5))
    out_ref[1] = _sigmoid_eup(x4 * (v1_b + x5))


@jax.jit
def model_forward(x1, key):
    """x1: (B, 2, 2) f32 -> (out (B,2,2), x2 (B,2,1)).

    x2 is drawn in-function (like torch.rand inside forward()) and returned
    only so the caller can verify against a reference.
    """
    B = x1.shape[0]
    dtype = x1.dtype

    # Lane extent L: batch index = c * L + l with c in [0,4), l in [0,L).
    L0 = pl.cdiv(pl.cdiv(B, 4), 128) * 128
    tile = _choose_tile(L0)
    L = pl.cdiv(L0, tile) * tile
    Bp = 4 * L

    # TODO(synk): torch.rand(x1.size(0), 2, 1) is drawn inside forward(); here
    # x2 has the same U[0,1) distribution but uses JAX's PRNG stream and is
    # generated directly in the packed (8, L) layout (no repack HBM pass).
    x2p = jax.random.uniform(key, (8, L), dtype=dtype)

    # Pack x1: (B,2,2) -> (j,i,batch), pad batch, then a contiguous (free)
    # reshape folds batch into (chunk, lane) and (i, chunk) into the sublanes.
    x1t = jnp.transpose(x1, (2, 1, 0))                 # (2, 2, B)
    if Bp != B:
        x1t = jnp.pad(x1t, ((0, 0), (0, 0), (0, Bp - B)))
    x1p = x1t.reshape(2, 2, 4, L).reshape(2, 8, L)     # (2, 8, L)

    outp = pl.pallas_call(
        _model_kernel,
        out_shape=jax.ShapeDtypeStruct((2, 8, L), dtype),
        grid=(L // tile,),
        in_specs=[
            pl.BlockSpec((2, 8, tile), lambda g: (0, 0, g)),
            pl.BlockSpec((8, tile), lambda g: (0, g)),
        ],
        out_specs=pl.BlockSpec((2, 8, tile), lambda g: (0, 0, g)),
        compiler_params=pltpu.CompilerParams(
            dimension_semantics=("parallel",),
            vmem_limit_bytes=32 * 1024 * 1024,
        ),
    )(x1p, x2p)

    # Unpack: (2, 8, L) -> (2, 2, Bp) -> (Bp, 2, 2) -> drop padding.
    out = jnp.transpose(outp.reshape(2, 2, Bp), (2, 1, 0))[:B]
    # x2 in the original (B, 2, 1) layout for the reference check only.
    x2 = jnp.transpose(x2p.reshape(2, Bp), (1, 0))[:B].reshape(B, 2, 1)
    return out, x2


def _reference(x1, x2):
    sm = jax.nn.softmax(x1, axis=-1)
    v1 = (x1 + sm) * x2
    x4 = jax.nn.sigmoid(x2)
    x5 = x2 * x2
    return jax.nn.sigmoid(x4 * (v1 + x5))


if __name__ == "__main__":
    key = jax.random.PRNGKey(0)
    k1, k2, k3 = jax.random.split(key, 3)

    # Multi-block case: B=1024 -> lane extent 256 -> grid of 2 (both v7x TCs).
    B = 1024
    x1 = jax.random.normal(k1, (B, 2, 2), dtype=jnp.float32)
    out, x2 = model_forward(x1, k2)
    jax.block_until_ready(out)
    ref = _reference(x1, x2)
    assert out.shape == ref.shape == (B, 2, 2)
    err = float(jnp.max(jnp.abs(out - ref)))
    assert jnp.allclose(out, ref, atol=1e-4, rtol=1e-4), err

    # Spec-sized ragged case: B=1 (exercises the padding / masking path).
    B2 = 1
    x1b = jax.random.normal(k3, (B2, 2, 2), dtype=jnp.float32)
    outb, x2b = model_forward(x1b, k2)
    jax.block_until_ready(outb)
    refb = _reference(x1b, x2b)
    assert outb.shape == refb.shape == (B2, 2, 2)
    errb = float(jnp.max(jnp.abs(outb - refb)))
    assert jnp.allclose(outb, refb, atol=1e-4, rtol=1e-4), errb

    print("KERNEL_OK")
</pallas_src>

<mosaic_0001>
module attributes {stable_mosaic.version = 11 : i64} {
  func.func @_model_kernel(%arg0: i32, %arg1: memref<2x8x128xf32, #tpu.memory_space<vmem>>, %arg2: memref<8x128xf32, #tpu.memory_space<vmem>>, %arg3: memref<2x8x128xf32, #tpu.memory_space<vmem>>) attributes {dimension_semantics = [#tpu.dimension_semantics<parallel>], iteration_bounds = array<i64: 2>, scalar_prefetch = 0 : i64, scratch_operands = 0 : i64, tpu.core_type = #tpu.core_type<tc>, window_params = [{transform_indices = @transform_0, window_bounds = array<i64: 2, 8, 128>}, {transform_indices = @transform_1, window_bounds = array<i64: 8, 128>}, {transform_indices = @transform_2, window_bounds = array<i64: 2, 8, 128>}]} {
    %c0 = arith.constant 0 : index
    %c0_0 = arith.constant 0 : index
    %c0_1 = arith.constant 0 : index
    %0 = vector.load %arg1[%c0, %c0_0, %c0_1] : memref<2x8x128xf32, #tpu.memory_space<vmem>>, vector<1x8x128xf32>
    %1 = vector.shape_cast %0 : vector<1x8x128xf32> to vector<8x128xf32>
    %c1 = arith.constant 1 : index
    %c0_2 = arith.constant 0 : index
    %c0_3 = arith.constant 0 : index
    %2 = vector.load %arg1[%c1, %c0_2, %c0_3] : memref<2x8x128xf32, #tpu.memory_space<vmem>>, vector<1x8x128xf32>
    %3 = vector.shape_cast %2 : vector<1x8x128xf32> to vector<8x128xf32>
    %c0_4 = arith.constant 0 : index
    %c0_5 = arith.constant 0 : index
    %4 = vector.load %arg2[%c0_4, %c0_5] : memref<8x128xf32, #tpu.memory_space<vmem>>, vector<8x128xf32>
    %5 = arith.subf %1, %3 : vector<8x128xf32>
    %cst = arith.constant 5.000000e-01 : f32
    %6 = vector.broadcast %cst : f32 to vector<8x128xf32>
    %7 = arith.mulf %6, %5 : vector<8x128xf32>
    %8 = math.tanh %7 : vector<8x128xf32>
    %cst_6 = arith.constant 5.000000e-01 : f32
    %9 = vector.broadcast %cst_6 : f32 to vector<8x128xf32>
    %10 = arith.mulf %9, %8 : vector<8x128xf32>
    %cst_7 = arith.constant 5.000000e-01 : f32
    %11 = vector.broadcast %cst_7 : f32 to vector<8x128xf32>
    %12 = arith.addf %10, %11 : vector<8x128xf32>
    %cst_8 = arith.constant 1.000000e+00 : f32
    %13 = vector.broadcast %cst_8 : f32 to vector<8x128xf32>
    %14 = arith.subf %13, %12 : vector<8x128xf32>
    %cst_9 = arith.constant 5.000000e-01 : f32
    %15 = vector.broadcast %cst_9 : f32 to vector<8x128xf32>
    %16 = arith.mulf %15, %4 : vector<8x128xf32>
    %17 = math.tanh %16 : vector<8x128xf32>
    %cst_10 = arith.constant 5.000000e-01 : f32
    %18 = vector.broadcast %cst_10 : f32 to vector<8x128xf32>
    %19 = arith.mulf %18, %17 : vector<8x128xf32>
    %cst_11 = arith.constant 5.000000e-01 : f32
    %20 = vector.broadcast %cst_11 : f32 to vector<8x128xf32>
    %21 = arith.addf %19, %20 : vector<8x128xf32>
    %22 = arith.mulf %4, %4 : vector<8x128xf32>
    %23 = arith.addf %1, %12 : vector<8x128xf32>
    %24 = arith.mulf %23, %4 : vector<8x128xf32>
    %25 = arith.addf %3, %14 : vector<8x128xf32>
    %26 = arith.mulf %25, %4 : vector<8x128xf32>
    %27 = arith.addf %24, %22 : vector<8x128xf32>
    %28 = arith.mulf %21, %27 : vector<8x128xf32>
    %cst_12 = arith.constant 5.000000e-01 : f32
    %29 = vector.broadcast %cst_12 : f32 to vector<8x128xf32>
    %30 = arith.mulf %29, %28 : vector<8x128xf32>
    %31 = math.tanh %30 : vector<8x128xf32>
    %cst_13 = arith.constant 5.000000e-01 : f32
    %32 = vector.broadcast %cst_13 : f32 to vector<8x128xf32>
    %33 = arith.mulf %32, %31 : vector<8x128xf32>
    %cst_14 = arith.constant 5.000000e-01 : f32
    %34 = vector.broadcast %cst_14 : f32 to vector<8x128xf32>
    %35 = arith.addf %33, %34 : vector<8x128xf32>
    %c0_15 = arith.constant 0 : index
    %c0_16 = arith.constant 0 : index
    %c0_17 = arith.constant 0 : index
    %36 = vector.load %arg3[%c0_15, %c0_16, %c0_17] : memref<2x8x128xf32, #tpu.memory_space<vmem>>, vector<1x8x128xf32>
    %37 = vector.shape_cast %36 : vector<1x8x128xf32> to vector<8x128xf32>
    %38 = vector.shape_cast %35 : vector<8x128xf32> to vector<1x8x128xf32>
    tpu.vector_store %arg3[%c0_15, %c0_16, %c0_17], %38 {strides = array<i32>} : memref<2x8x128xf32, #tpu.memory_space<vmem>>, vector<1x8x128xf32>,
    %39 = arith.addf %26, %22 : vector<8x128xf32>
    %40 = arith.mulf %21, %39 : vector<8x128xf32>
    %cst_18 = arith.constant 5.000000e-01 : f32
    %41 = vector.broadcast %cst_18 : f32 to vector<8x128xf32>
    %42 = arith.mulf %41, %40 : vector<8x128xf32>
    %43 = math.tanh %42 : vector<8x128xf32>
    %cst_19 = arith.constant 5.000000e-01 : f32
    %44 = vector.broadcast %cst_19 : f32 to vector<8x128xf32>
    %45 = arith.mulf %44, %43 : vector<8x128xf32>
    %cst_20 = arith.constant 5.000000e-01 : f32
    %46 = vector.broadcast %cst_20 : f32 to vector<8x128xf32>
    %47 = arith.addf %45, %46 : vector<8x128xf32>
    %c1_21 = arith.constant 1 : index
    %c0_22 = arith.constant 0 : index
    %c0_23 = arith.constant 0 : index
    %48 = vector.load %arg3[%c1_21, %c0_22, %c0_23] : memref<2x8x128xf32, #tpu.memory_space<vmem>>, vector<1x8x128xf32>
    %49 = vector.shape_cast %48 : vector<1x8x128xf32> to vector<8x128xf32>
    %50 = vector.shape_cast %47 : vector<8x128xf32> to vector<1x8x128xf32>
    tpu.vector_store %arg3[%c1_21, %c0_22, %c0_23], %50 {strides = array<i32>} : memref<2x8x128xf32, #tpu.memory_space<vmem>>, vector<1x8x128xf32>,
    return
  }
  func.func @transform_0(%arg0: i32) -> (i32, i32, i32) {
    %c0_i32 = arith.constant 0 : i32
    %c0_i32_0 = arith.constant 0 : i32
    %c0_i32_1 = arith.constant 0 : i32
    return %c0_i32, %c0_i32_0, %arg0 : i32, i32, i32
  }
  func.func @transform_1(%arg0: i32) -> (i32, i32) {
    %c0_i32 = arith.constant 0 : i32
    %c0_i32_0 = arith.constant 0 : i32
    return %c0_i32, %arg0 : i32, i32
  }
  func.func @transform_2(%arg0: i32) -> (i32, i32, i32) {
    %c0_i32 = arith.constant 0 : i32
    %c0_i32_0 = arith.constant 0 : i32
    %c0_i32_1 = arith.constant 0 : i32
    return %c0_i32, %c0_i32_0, %arg0 : i32, i32, i32
  }
}

</mosaic_0001>

<bundles_post_ra>
// kernel: model_forward.1
= control target key start
LH: loop header
LB: loop body
LE: loop exit
PB: predicated region body
PF: predicated region fallthrough
CT: control target
= control target key end

     0   :  { %s427_s9 = smov 0   ;;  %s429_s10 = smov 0   ;;  %s486_s0 = inlined_call_operand.vmem [shape: f32[2,8,256], index: 0, kind: input, shape index: {}]   ;;  %s487_s1 = inlined_call_operand.vmem [shape: f32[8,256], index: 1, kind: input, shape index: {}]   ;;  %s488_s2 = inlined_call_operand.vmem [shape: f32[2,8,256], index: 2, kind: output, shape index: {}]  }
   0x1   :  { %s431_s11 = smov 0  }
   0x2 LB: > { %s440_s12 = sadd.s32 4294967295, %s410_s11   ;;  %s442_s13 = sadd.s32 1, %s410_s11   ;;  %s410_s11 = sphi %s431_s11, %s492_s11   ;;  %s406_s10 = sphi %s429_s10, %s491_s10   ;;  %s402_s9 = sphi %s427_s9, %s490_s9  }
   0x3   : > { %s16_s14 = ssub.s32 %s410_s11, %s442_s13  ;;  %s19_s15 = sadd.s32 1, %s406_s10 }
   0x4   : > { %p17_p0 = scmp.eq.s32.totalorder %s16_s14, 0  ;;  %p26_p1 = scmp.ne.s32.totalorder %s406_s10, %s402_s9 }
   0x5   : > { %p27_p2 = scmp.eq.s32.totalorder %s410_s11, 0  ;;  %p82_p3 = scmp.eq.s32.totalorder %s440_s12, 1 }
   0x6   : > { %s450_s16 = scalar_select %p17_p0, %s406_s10, %s19_s15  }
   0x7   : > { %p28_p4 = por %p27_p2, %p26_p1  ;;  %p452_p5 = por %p82_p3, %p26_p1 }
   0x8   : > { %p343_p6 = scmp.ge.s32.totalorder %s410_s11, 2 }
   0xa   : > { %104 = sbr.rel (%p343_p6) target bundleno = 24 (0x18), region = 16 }
  0x11   : > { %107 = sbr.rel (!%p28_p4) target bundleno = 24 (0x18), region = 20  ;;  %s109_s18 = sand.u32 (%p28_p4), 1, %s406_s10  }
  0x12   : > { %s345_s19 = sshll.u32 (%p28_p4), %s410_s11, 3  ;;  %s344_s20 = sshll.u32 (%p28_p4), %s109_s18, 4 }
  0x13   : > { %s113_s23 = scalar_lea.vmem (%p28_p4), %s486_s0, %s345_s19  ;;  %s111_s24 = scalar_lea.vmem (%p28_p4), [#allocation2], %s344_s20 }
  0x14   : > { %v143_v0 = vld [vmem:[%s113_s23] sm:$0xff] (%p28_p4)  ;;  %v145_v1 = vld [vmem:[%s113_s23 + $0x10] sm:$0xff] (%p28_p4) }
  0x15   : > { %144 = vst [vmem:[%s111_s24] sm:$0xff] (%p28_p4), %v143_v0  ;;  %146 = vst [vmem:[%s111_s24 + $0x8] sm:$0xff] (%p28_p4), %v145_v1 }
  0x18 PF: > { %p346_p7 = scmp.ge.s32.totalorder %s410_s11, 1  ;;  %p158_p8 = scmp.lt.s32.totalorder %s410_s11, 3 }
  0x1a   : > { %p159_p9 = pnand %p346_p7, %p158_p8 }
  0x1b   : > { %s165_s25 = sand.u32 (!%p159_p9), 1, %s402_s9   ;;  %p189_p10 = scmp.lt.s32.totalorder (!%p159_p9), %s440_s12, 1 }
  0x1c   : > { %162 = sbr.rel (%p159_p9) target bundleno = 86 (0x56), region = 62  ;;  %s462_s26 = sshll.u32 (!%p159_p9), %s165_s25, 4 }
  0x1d   : > { %s167_s28 = scalar_lea.vmem (!%p159_p9), [#allocation2], %s462_s26  ;;  %s188_s5 = scalar_lea.vmem (!%p159_p9), [#allocation3], %s462_s26 }
  0x1e   : > { %v193_v2 = vld [vmem:[%s167_s28] sm:$0xff] (!%p159_p9)  ;;  %v350_v3 = vld [vmem:[%s167_s28 + $0x8] sm:$0xff] (!%p159_p9) }
  0x1f   : > { %v197_v4 = vsub.f32 (!%p159_p9), %v193_v2, %v350_v3 }
  0x21   : > { %v198_v5 = vmul.f32 (!%p159_p9), 0.5, %v197_v4 }
  0x23   : > { %s190_s27 = scalar_select %p189_p10, %s440_s12, 1  ;;  %380 = vtanh.f32 %v198_v5 }
  0x24   : > { %s353_s6 = sshll.u32 (%p452_p5), %s440_s12, 3 }
  0x25   : > { %s349_s29 = sshll.u32 %s190_s27, 3  ;;  %s235_s9 = scalar_lea.vmem (%p452_p5), %s488_s2, %s353_s6 }
  0x26   : > { %s192_s4 = scalar_lea.vmem %s487_s1, %s349_s29 }
  0x27   : > { %v196_v6 = vld [vmem:[%s192_s4] sm:$0xff] }
  0x28   : > { %v203_v7 = vmul.f32 0.5, %v196_v6  ;;  %v207_v14 = vmul.f32 %v196_v6, %v196_v6 }
  0x2a   : > { %382 = vtanh.f32 %v203_v7 }
  0x2d   : > { %v381_v8 = vpop.eup %380 }
  0x2e   : > { %v200_v9 = vmul.f32 0.5, %v381_v8 }
  0x30   : > { %v201_v11 = vadd.f32 0.5, %v200_v9 }
  0x32   : > { %v202_v13 = vsub.f32 1.0, %v201_v11  ;;  %v208_v15 = vadd.f32 %v201_v11, %v193_v2 }
  0x34   : > { %v383_v10 = vpop.eup %382  ;;  %v209_v17 = vmul.f32 %v208_v15, %v196_v6  ;;  %v210_v18 = vadd.f32 %v350_v3, %v202_v13 }
  0x35   : > { %v205_v12 = vmul.f32 0.5, %v383_v10 }
  0x36   : > { %v211_v19 = vmul.f32 %v210_v18, %v196_v6  ;;  %v212_v20 = vadd.f32 %v209_v17, %v207_v14 }
  0x37   : > { %v206_v16 = vadd.f32 0.5, %v205_v12 }
  0x38   : > { %v219_v22 = vadd.f32 %v211_v19, %v207_v14 }
  0x39   : > { %v213_v21 = vmul.f32 %v212_v20, %v206_v16 }
  0x3a   : > { %v220_v24 = vmul.f32 %v219_v22, %v206_v16 }
  0x3b   : > { %v214_v23 = vmul.f32 0.5, %v213_v21 }
  0x3c   : > { %v221_v25 = vmul.f32 0.5, %v220_v24 }
  0x3d   : > { %384 = vtanh.f32 %v214_v23 }
  0x3e   : > { %386 = vtanh.f32 %v221_v25 }
  0x47   : > { %v385_v26 = vpop.eup %384  ;;  %233 = sbr.rel (!%p452_p5) target bundleno = 86 (0x56), region = 70 }
  0x48   : > { %v216_v27 = vmul.f32 0.5, %v385_v26  ;;  %v387_v28 = vpop.eup %386 }
  0x49   : > { %v223_v30 = vmul.f32 0.5, %v387_v28 }
  0x4a   : > { %v217_v29 = vadd.f32 0.5, %v216_v27 }
  0x4b   : > { %v224_v31 = vadd.f32 0.5, %v223_v30 }
  0x4c   : > { %218 = vst [vmem:[%s188_s5] sm:$0xff] %v217_v29 }
  0x4d   : > { %351 = vst [vmem:[%s188_s5 + $0x8] sm:$0xff] %v224_v31 }
  0x53   : > { %v265_v32 = vld [vmem:[%s188_s5] sm:$0xff] }
  0x54   : > { %v267_v33 = vld [vmem:[%s188_s5 + $0x8] sm:$0xff]  ;;  %266 = vst [vmem:[%s235_s9] sm:$0xff] %v265_v32 }
  0x55   : > { %268 = vst [vmem:[%s235_s9 + $0x10] sm:$0xff] %v267_v33 }
  0x56 PF: > { %p9_p11 = scmp.ge.s32.totalorder %s442_s13, 4   ;;  %s490_s9 = smov %s406_s10 }
  0x57   : > { %s491_s10 = smov %s450_s16  ;;  %s492_s11 = smov %s442_s13 }
  0x58   :  { %11 = sbr.rel (!%p9_p11) target bundleno = 2 (0x2), region = 144 }

</bundles_post_ra>
